<compile_context>
chip_gen: v7x
topology: tpu7x:2x2x1
jax: 0.10.0
libtpu: 0.0.40
codegen_flags: <defaults>
</compile_context>

<pallas_src>
import functools

import jax
import jax.numpy as jnp
from jax.experimental import pallas as pl
from jax.experimental.pallas import tpu as pltpu

LANE = 128
_MXU_DTYPE = jnp.bfloat16
_VMEM_LIMIT_BYTES = 48 * 1024 * 1024  # fits v5e/v6e/v7x physical VMEM


def _round_up(x, m):
    return ((x + m - 1) // m) * m


def gnn_reasoning_kernel(x_ref, adj_ref, w_fused_ref, wg_ref, out_ref):
    """One batch-chunk of the GNNReasoning forward pass."""
    Bc, N, Dp = x_ref.shape
    rows = Bc * N

    # --- fused A_Dense | res_Dense | att-logit: one MXU matmul (bf16 -> f32 acc)
    x2 = x_ref[...].reshape(rows, Dp)                               # bf16
    fused = jnp.dot(x2, w_fused_ref[...],
                    preferred_element_type=jnp.float32)             # (rows, 2*Dp+LANE)
    a_feat = fused[:, :Dp]                                          # A_Dense(inputs)
    res = fused[:, Dp:2 * Dp]                                       # res_Dense(inputs)
    att = fused[:, 2 * Dp:2 * Dp + 1]                               # A @ Watt

    # --- attention gate (f32 on VPU/EUP) ------------------------------------
    alpha = jax.nn.sigmoid(jnp.tanh(att))                           # (rows, 1)
    neighbor_h = (alpha * a_feat).astype(_MXU_DTYPE)

    # --- GraphConvolution: adj @ (neighbor_h @ Wg), degree-normalized -------
    support = jnp.dot(neighbor_h, wg_ref[...],
                      preferred_element_type=jnp.float32)
    support = support.astype(_MXU_DTYPE).reshape(Bc, N, Dp)

    adj_f = adj_ref[...].astype(jnp.float32)                        # (Bc, N, N)
    deg = jnp.sum(adj_f, axis=-1, keepdims=True)                    # (Bc, N, 1) f32
    inv_deg = pl.reciprocal(deg, approx=True)                       # EUP slot

    if N <= Dp:
        # Normalize on the cheaper (adj) side of the matmul: Bc*N*N muls.
        adj_mm = (adj_f * inv_deg).astype(_MXU_DTYPE)
        num_emb = jnp.einsum('bij,bjd->bid', adj_mm, support,
                             preferred_element_type=jnp.float32)
    else:
        gc = jnp.einsum('bij,bjd->bid', adj_ref[...], support,
                        preferred_element_type=jnp.float32)
        num_emb = gc * inv_deg

    out = num_emb + res.reshape(Bc, N, Dp)
    out_ref[...] = out.astype(out_ref.dtype)


def prepare_params(params):
    """One-time weight packing / padding (hoisted out of the per-call hot path)."""
    D = params["wa"].shape[0]
    Dp = _round_up(max(D, LANE), LANE)
    pad = Dp - D

    wa = params["wa"].astype(jnp.float32)
    wres = params["wres"].astype(jnp.float32)
    watt = params["watt"].astype(jnp.float32).reshape(D, 1)
    wg = params["wg"].astype(jnp.float32)

    # att = (x @ Wa) @ Watt == x @ (Wa @ Watt): pre-compose in f32 so the logit
    # comes out of the same fused matmul as A and the residual projection.
    watt_col = wa @ watt                                            # (D, 1)

    wa_p = jnp.pad(wa, ((0, pad), (0, pad)))
    wres_p = jnp.pad(wres, ((0, pad), (0, pad)))
    watt_p = jnp.pad(watt_col, ((0, pad), (0, LANE - 1)))           # (Dp, 128)
    w_fused = jnp.concatenate([wa_p, wres_p, watt_p], axis=1).astype(_MXU_DTYPE)
    wg_p = jnp.pad(wg, ((0, pad), (0, pad))).astype(_MXU_DTYPE)
    return {"w_fused": w_fused, "wg": wg_p}


def _choose_block_b(B, N, Dp, budget_bytes):
    """Largest divisor of B whose per-step working set fits the VMEM budget."""
    per_b = (2 * (N * Dp * 2 + N * N * 2 + N * Dp * 4)              # dbl-buffered I/O
             + (N * (2 * Dp + LANE) + 3 * N * Dp + 2 * N * N) * 4)  # f32 intermediates
    best = 1
    for bc in range(1, B + 1):
        if B % bc == 0 and bc * per_b <= budget_bytes:
            best = bc
    return best


@functools.partial(jax.jit, static_argnames=("block_b",))
def gnn_reasoning(inputs, adj, prepared, block_b=None):
    """inputs: (B, N, D) f32; adj: (B, N, N) f32; prepared: prepare_params(...)."""
    B, N, D = inputs.shape
    Dp = prepared["w_fused"].shape[0]
    pad = Dp - D

    # Lane-dense feature padding (zeros stay exactly zero end-to-end) + bf16 cast.
    x_p = jnp.pad(inputs, ((0, 0), (0, 0), (0, pad))).astype(_MXU_DTYPE)
    adj_b = adj.astype(_MXU_DTYPE)

    if block_b is None:
        block_b = _choose_block_b(B, N, Dp, budget_bytes=_VMEM_LIMIT_BYTES // 2)
    assert B % block_b == 0, "block_b must divide the batch"
    grid = (B // block_b,)

    wf = prepared["w_fused"]
    wg = prepared["wg"]

    out = pl.pallas_call(
        gnn_reasoning_kernel,
        out_shape=jax.ShapeDtypeStruct((B, N, Dp), jnp.float32),
        grid_spec=pltpu.PrefetchScalarGridSpec(
            num_scalar_prefetch=0,
            grid=grid,
            in_specs=[
                pl.BlockSpec((block_b, N, Dp), lambda b: (b, 0, 0)),   # inputs chunk
                pl.BlockSpec((block_b, N, N), lambda b: (b, 0, 0)),    # adjacency chunk
                pl.BlockSpec(wf.shape, lambda b: (0, 0)),              # [Wa | Wres | Wa@Watt]
                pl.BlockSpec(wg.shape, lambda b: (0, 0)),              # Wg
            ],
            out_specs=pl.BlockSpec((block_b, N, Dp), lambda b: (b, 0, 0)),
        ),
        compiler_params=pltpu.CompilerParams(
            dimension_semantics=("parallel",),        # v7x: shard batch over both TCs
            vmem_limit_bytes=_VMEM_LIMIT_BYTES,
        ),
    )(x_p, adj_b, wf, wg)

    return out[..., :D]


def reference(inputs, adj, p):
    """Pure-JAX f32 reference of the GNNReasoning forward pass (defaults)."""
    A = inputs @ p["wa"]
    att = jnp.tanh(A @ p["watt"])
    alpha = jax.nn.sigmoid(att)
    neighbor_h = alpha * A
    support = neighbor_h @ p["wg"]
    gc = jnp.einsum('bij,bjd->bid', adj, support)
    num_emb = gc / jnp.sum(adj, axis=-1, keepdims=True)
    res = inputs @ p["wres"]
    return res + num_emb


if __name__ == "__main__":
    # Small shapes: batch=2, seq(nodes)=8, hidden=in_features=out_features=32
    B, S, H = 2, 8, 32

    key = jax.random.PRNGKey(0)
    ks = jax.random.split(key, 6)

    inputs = jax.random.normal(ks[0], (B, S, H), dtype=jnp.float32)
    adj = jax.random.uniform(ks[1], (B, S, S), dtype=jnp.float32,
                             minval=0.1, maxval=1.0)

    scale = 0.2
    params = {
        "wa":   scale * jax.random.normal(ks[2], (H, H), jnp.float32),
        "wres": scale * jax.random.normal(ks[3], (H, H), jnp.float32),
        "watt": scale * jax.random.normal(ks[4], (H, 1), jnp.float32),
        "wg":   scale * jax.random.normal(ks[5], (H, H), jnp.float32),
    }

    prepared = prepare_params(params)          # one-time weight packing

    # block_b=1 -> grid=(2,): exercises the pipelined batch grid + resident weights.
    out = gnn_reasoning(inputs, adj, prepared, block_b=1)
    out = jax.block_until_ready(out)

    ref = reference(inputs, adj, params)
    assert out.shape == (B, S, H)
    # bf16 MXU operands (f32 accumulation) + approx reciprocal => ~1e-2 level error
    # vs the pure-f32 reference.
    assert jnp.allclose(out, ref, atol=2e-2, rtol=2e-2), "mismatch vs JAX reference"

    print("KERNEL_OK")
</pallas_src>

<mosaic_0001>
module attributes {stable_mosaic.version = 11 : i64} {
  func.func @gnn_reasoning_kernel(%arg0: i32, %arg1: memref<1x8x128xbf16, #tpu.memory_space<vmem>>, %arg2: memref<1x8x8xbf16, #tpu.memory_space<vmem>>, %arg3: memref<128x384xbf16, #tpu.memory_space<vmem>>, %arg4: memref<128x128xbf16, #tpu.memory_space<vmem>>, %arg5: memref<1x8x128xf32, #tpu.memory_space<vmem>>) attributes {dimension_semantics = [#tpu.dimension_semantics<parallel>], iteration_bounds = array<i64: 2>, scalar_prefetch = 0 : i64, scratch_operands = 0 : i64, tpu.core_type = #tpu.core_type<tc>, window_params = [{transform_indices = @transform_0, window_bounds = array<i64: 1, 8, 128>}, {transform_indices = @transform_1, window_bounds = array<i64: 1, 8, 8>}, {pipeline_mode = #tpu.pipeline_mode<synchronous>, transform_indices = @transform_2, window_bounds = array<i64: 128, 384>}, {pipeline_mode = #tpu.pipeline_mode<synchronous>, transform_indices = @transform_3, window_bounds = array<i64: 128, 128>}, {transform_indices = @transform_4, window_bounds = array<i64: 1, 8, 128>}]} {
    %c0 = arith.constant 0 : index
    %c0_0 = arith.constant 0 : index
    %c0_1 = arith.constant 0 : index
    %0 = vector.load %arg1[%c0, %c0_0, %c0_1] : memref<1x8x128xbf16, #tpu.memory_space<vmem>>, vector<1x8x128xbf16>
    %1 = vector.shape_cast %0 : vector<1x8x128xbf16> to vector<8x128xbf16>
    %c0_2 = arith.constant 0 : index
    %c0_3 = arith.constant 0 : index
    %2 = vector.load %arg3[%c0_2, %c0_3] : memref<128x384xbf16, #tpu.memory_space<vmem>>, vector<128x384xbf16>
    %cst = arith.constant dense<0.000000e+00> : vector<8x384xf32>
    %3 = tpu.matmul %1, %2, %cst {dimension_numbers = #tpu.dot_dimension_numbers<[1], [0], [0], [1], [0, 0, 1, 1], [], []>} : vector<8x128xbf16>, vector<128x384xbf16>, vector<8x384xf32> -> vector<8x384xf32>
    %4 = vector.extract_strided_slice %3 {offsets = [0, 0], sizes = [8, 128], strides = [1, 1]} : vector<8x384xf32> to vector<8x128xf32>
    %5 = vector.extract_strided_slice %3 {offsets = [0, 128], sizes = [8, 128], strides = [1, 1]} : vector<8x384xf32> to vector<8x128xf32>
    %6 = vector.extract_strided_slice %3 {offsets = [0, 256], sizes = [8, 1], strides = [1, 1]} : vector<8x384xf32> to vector<8x1xf32>
    %7 = math.tanh %6 : vector<8x1xf32>
    %8 = arith.negf %7 : vector<8x1xf32>
    %9 = math.exp %8 : vector<8x1xf32>
    %cst_4 = arith.constant 1.000000e+00 : f32
    %10 = vector.broadcast %cst_4 : f32 to vector<8x1xf32>
    %11 = arith.addf %10, %9 : vector<8x1xf32>
    %12 = arith.divf %10, %11 : vector<8x1xf32>
    %13 = vector.broadcast %12 : vector<8x1xf32> to vector<8x128xf32>
    %14 = arith.mulf %13, %4 : vector<8x128xf32>
    %15 = arith.truncf %14 : vector<8x128xf32> to vector<8x128xbf16>
    %c0_5 = arith.constant 0 : index
    %c0_6 = arith.constant 0 : index
    %16 = vector.load %arg4[%c0_5, %c0_6] : memref<128x128xbf16, #tpu.memory_space<vmem>>, vector<128x128xbf16>
    %cst_7 = arith.constant dense<0.000000e+00> : vector<8x128xf32>
    %17 = tpu.matmul %15, %16, %cst_7 {dimension_numbers = #tpu.dot_dimension_numbers<[1], [0], [0], [1], [0, 0, 1, 1], [], []>} : vector<8x128xbf16>, vector<128x128xbf16>, vector<8x128xf32> -> vector<8x128xf32>
    %18 = arith.truncf %17 : vector<8x128xf32> to vector<8x128xbf16>
    %19 = vector.shape_cast %18 : vector<8x128xbf16> to vector<1x8x128xbf16>
    %c0_8 = arith.constant 0 : index
    %c0_9 = arith.constant 0 : index
    %c0_10 = arith.constant 0 : index
    %20 = vector.load %arg2[%c0_8, %c0_9, %c0_10] : memref<1x8x8xbf16, #tpu.memory_space<vmem>>, vector<1x8x8xbf16>
    %21 = arith.extf %20 : vector<1x8x8xbf16> to vector<1x8x8xf32>
    %cst_11 = arith.constant dense<0.000000e+00> : vector<1x8xf32>
    %22 = vector.multi_reduction <add>, %21, %cst_11 [2] : vector<1x8x8xf32> to vector<1x8xf32>
    %23 = vector.shape_cast %22 : vector<1x8xf32> to vector<1x8x1xf32>
    %24 = tpu.reciprocal %23 {approx = true} : vector<1x8x1xf32> -> vector<1x8x1xf32>
    %25 = vector.broadcast %24 : vector<1x8x1xf32> to vector<1x8x8xf32>
    %26 = arith.mulf %21, %25 : vector<1x8x8xf32>
    %27 = arith.truncf %26 : vector<1x8x8xf32> to vector<1x8x8xbf16>
    "tpu.trace_start"() <{level = 10 : i32, message = "bij,bjd->bid"}> : () -> ()
    %cst_12 = arith.constant dense<0.000000e+00> : vector<1x8x128xf32>
    %28 = tpu.matmul %27, %19, %cst_12 {dimension_numbers = #tpu.dot_dimension_numbers<[2], [1], [1], [2], [0, 0, 0, 1, 1, 2], [0], [0]>} : vector<1x8x8xbf16>, vector<1x8x128xbf16>, vector<1x8x128xf32> -> vector<1x8x128xf32>
    "tpu.trace_stop"() : () -> ()
    %29 = vector.shape_cast %5 : vector<8x128xf32> to vector<1x8x128xf32>
    %30 = arith.addf %28, %29 : vector<1x8x128xf32>
    %c0_13 = arith.constant 0 : index
    %c0_14 = arith.constant 0 : index
    %c0_15 = arith.constant 0 : index
    %31 = vector.load %arg5[%c0_13, %c0_14, %c0_15] : memref<1x8x128xf32, #tpu.memory_space<vmem>>, vector<1x8x128xf32>
    tpu.vector_store %arg5[%c0_13, %c0_14, %c0_15], %30 {strides = array<i32>} : memref<1x8x128xf32, #tpu.memory_space<vmem>>, vector<1x8x128xf32>,
    return
  }
  func.func @transform_0(%arg0: i32) -> (i32, i32, i32) {
    %c0_i32 = arith.constant 0 : i32
    %c0_i32_0 = arith.constant 0 : i32
    %c0_i32_1 = arith.constant 0 : i32
    return %arg0, %c0_i32, %c0_i32_0 : i32, i32, i32
  }
  func.func @transform_1(%arg0: i32) -> (i32, i32, i32) {
    %c0_i32 = arith.constant 0 : i32
    %c0_i32_0 = arith.constant 0 : i32
    %c0_i32_1 = arith.constant 0 : i32
    return %arg0, %c0_i32, %c0_i32_0 : i32, i32, i32
  }
  func.func @transform_2(%arg0: i32) -> (i32, i32) {
    %c0_i32 = arith.constant 0 : i32
    %c0_i32_0 = arith.constant 0 : i32
    %c0_i32_1 = arith.constant 0 : i32
    return %c0_i32, %c0_i32_0 : i32, i32
  }
  func.func @transform_3(%arg0: i32) -> (i32, i32) {
    %c0_i32 = arith.constant 0 : i32
    %c0_i32_0 = arith.constant 0 : i32
    %c0_i32_1 = arith.constant 0 : i32
    return %c0_i32, %c0_i32_0 : i32, i32
  }
  func.func @transform_4(%arg0: i32) -> (i32, i32, i32) {
    %c0_i32 = arith.constant 0 : i32
    %c0_i32_0 = arith.constant 0 : i32
    %c0_i32_1 = arith.constant 0 : i32
    return %arg0, %c0_i32, %c0_i32_0 : i32, i32, i32
  }
}

</mosaic_0001>

<bundles_post_ra>
// kernel: gnn_reasoning.1
= control target key start
LH: loop header
LB: loop body
LE: loop exit
PB: predicated region body
PF: predicated region fallthrough
CT: control target
= control target key end

     0   :  { %9 = vsyncpa [#allocation3], 0  ;;  %s1280_s0 = inlined_call_operand.vmem [shape: bf16[2,8,128], index: 0, kind: input, shape index: {}]   ;;  %s1281_s1 = inlined_call_operand.vmem [shape: bf16[2,8,8], index: 1, kind: input, shape index: {}]   ;;  %s1282_s2 = inlined_call_operand.hbm [shape: bf16[128,384], index: 2, kind: input, shape index: {}]   ;;  %s1283_s3 = inlined_call_operand.vmem [shape: bf16[128,128], index: 3, kind: input, shape index: {}]   ;;  %s1284_s4 = inlined_call_operand.hbm [shape: f32[2,8,128], index: 4, kind: output, shape index: {}]  }
   0x1   :  { %10 = vsyncpa [#allocation4], 0 }
   0x2   :  { %12 = vsyncpa [#allocation4 + $0x1], 0  ;;  %s1086_s15 = smov 0   ;;  %s1088_s16 = smov 0  }
   0x3   :  { %s1090_s17 = smov 0   ;;  %s1092_s18 = smov 0  }
   0x4 LB: > { %s1107_s19 = sadd.s32 4294967295, %s1052_s18   ;;  %s741_s20 = sadd.s32 4294967294, %s1052_s18   ;;  %s1052_s18 = sphi %s1092_s18, %s1300_s18   ;;  %s1048_s17 = sphi %s1090_s17, %s1299_s17   ;;  %s1044_s16 = sphi %s1088_s16, %s1298_s16   ;;  %s1040_s15 = sphi %s1086_s15, %s1297_s15  }
   0x5   : > { %s1111_s21 = sadd.s32 1, %s1052_s18   ;;  %s119_s22 = sadd.s32 1, %s1048_s17 }
   0x6   : > { %s116_s23 = ssub.s32 %s1052_s18, %s1111_s21  ;;  %p129_p0 = scmp.ne.s32.totalorder %s1048_s17, %s1044_s16 }
   0x7   : > { %p117_p1 = scmp.eq.s32.totalorder %s116_s23, 0  ;;  %p130_p2 = scmp.eq.s32.totalorder %s1107_s19, 1 }
   0x8   : > { %p135_p3 = scmp.ne.s32.totalorder %s1044_s16, %s1040_s15  ;;  %p136_p4 = scmp.eq.s32.totalorder %s741_s20, 1 }
   0x9   : > { %s1122_s24 = scalar_select %p117_p1, %s1048_s17, %s119_s22  }
   0xa   : > { %p1124_p5 = por %p130_p2, %p129_p0  ;;  %p1128_p6 = por %p136_p4, %p135_p3 }
   0xb   : > { %p742_p7 = scmp.ge.s32.totalorder %s1052_s18, 1  ;;  %p143_p8 = scmp.lt.s32.totalorder %s1052_s18, 3 }
   0xc   : > { %s1288_s25 = scalar_select %p1124_p5, 1, 0 }
   0xd   : > { %s1289_s26 = scalar_select %p1128_p6, 1, 0 }
   0xe   : > { %p1285_p9 = scmp.eq.s32.totalorder %s1107_s19, 0  ;;  %p1135_p10 = pnand %p742_p7, %p143_p8 }
   0xf   : > { %s1054_s28 = smov [#allocation2]   ;;  %s958_s7 = scalar_lea.hbm %s1282_s2, 3072 }
  0x10   : > { %s1290_s27 = scalar_select %p1135_p10, 1, 0 }
  0x11   : > { %s155_s29 = sshll.u32 %s1054_s28, 4  ;;  %p860_p11 = pneg %p1135_p10  ;;  %s156_s29 = int_to_ptr.vmem [resolvable:$true] %s155_s29 }
  0x12   : > { %p959_p13 = scmp.ne.s32.totalorder %s1282_s2, %s958_s7  ;;  %p965_p3 = scmp.lt.u32.totalorder %s958_s7, %s1282_s2 }
  0x13   : > { %p1143_p12 = pnand %p1285_p9, %p860_p11 }
  0x15   : > { %p960_p0 = pneg %p1143_p12 }
  0x17   : > { %p961_p1 = pnand %p960_p0, %p959_p13 }
  0x19   : > { %p962_p2 = pneg %p961_p1 }
  0x1b   : > { %p967_p4 = pnand %p965_p3, %p962_p2 }
  0x1d   : > { %970 = shalt.err (!%p967_p4)
}
  0x1e   : > { %s971_s12 = scalar_lea.vmem %s156_s29, 3072  ;;  %p979_p9 = scmp.lt.s32.totalorder %s156_s29, %s156_s29 }
  0x1f   : > { %p972_p7 = scmp.ne.s32.totalorder %s156_s29, %s971_s12  ;;  %p980_p6 = scmp.lt.s32.totalorder %s971_s12, %s971_s12 }
  0x21   : > { %p974_p8 = pnand %p972_p7, %p960_p0  ;;  %p981_p5 = por %p980_p6, %p979_p9 }
  0x23   : > { %p975_p11 = pneg %p974_p8 }
  0x25   : > { %p982_p10 = pnand %p981_p5, %p975_p11 }
  0x27   : > { %985 = shalt.err (!%p982_p10)
}
  0x28   : > { %s1055_s13 = smov 192   ;;  %s1056_s14 = smov 12  }
  0x29   : > { %863 = dma.hbm_to_vmem [thread:$0]  (!%p1143_p12), %s1282_s2, 3072, %s156_s29, [#allocation3], %s1055_s13, %s1055_s13, %s1056_s14  }
  0x2a   : > { %p1292_p13 = scmp.ne.s32.totalorder %s1290_s27, 0 }
  0x2b   : > { %p1293_p1 = scmp.eq.s32.totalorder (!%p1292_p13), %s1107_s19, 0 }
  0x2c   : > { %188 = sbr.rel (%p1292_p13) target bundleno = 913 (0x391), region = 36 }
  0x33   : > { %1031 = dma.done.wait (%p1293_p1), [#allocation3], 3072   ;;  %p1294_p0 = pmov %p1293_p1 }
  0x34   : > { %v1057_v0 = vmov 0.0   ;;  %vm1058_vm0 = vmmov 0   ;;  %v1059_v1 = vmov 0   ;;  %v910_v2 = vld [vmem:[#allocation2 + $0x8] ss:$12 sps:$4 sm:$0xff]   ;;  %p217_p5 = scmp.lt.s32.totalorder %s1107_s19, 1 }
  0x35   : > { %1033 = vsyncadd (%p1294_p0), [#allocation3], 4294964224  ;;  %808 = vmatprep.subr.bf16.mxu1 %v1057_v0  ;;  %824 = vmatprep.mubr.msk.bf16.mxu1 %vm1058_vm0, %v1057_v0  ;;  %v911_v3 = vld [vmem:[#allocation2 + $0x20] ss:$12 sps:$4 sm:$0xff]   ;;  %v912_v4 = vld [vmem:[#allocation2 + $0x38] ss:$12 sps:$4 sm:$0xff]  }
  0x36   : > { %419 = vmatprep.mubr.bf16.mxu0 %v1059_v1  ;;  %909 = vset.pattern.permute.xlu0 %v1059_v1  ;;  %v918_v5 = vld [vmem:[#allocation2 + $0x4] ss:$12 sps:$4 sm:$0xff]   ;;  %v920_v6 = vld [vmem:[#allocation2] ss:$12 sps:$4 sm:$0xff]   ;;  %v921_v8 = vld [vmem:[#allocation2 + $0x1c] ss:$12 sps:$4 sm:$0xff]  }
  0x37   : > { %809 = vmatpush3.bf16.msra.mxu1 %v910_v2  ;;  %v913_v7 = vld [vmem:[#allocation2 + $0x50] ss:$12 sps:$4 sm:$0xff]   ;;  %387 = vmatprep.subr.bf16.mxu0 %v918_v5  ;;  %v923_v9 = vld [vmem:[#allocation2 + $0x18] ss:$12 sps:$4 sm:$0xff]   ;;  %v924_v10 = vld [vmem:[#allocation2 + $0x34] ss:$12 sps:$4 sm:$0xff]  }
  0x38   : > { %810 = vmatprep.subr.bf16.mxu1 %v1057_v0  ;;  %388 = vmatpush1.bf16.msra.mxu0 %v920_v6  ;;  %v914_v11 = vld [vmem:[#allocation2 + $0x68] ss:$12 sps:$4 sm:$0xff]   ;;  %v926_v12 = vld [vmem:[#allocation2 + $0x30] ss:$12 sps:$4 sm:$0xff]   ;;  %v927_v13 = vld [vmem:[#allocation2 + $0x4c] ss:$12 sps:$4 sm:$0xff]  }
  0x39   : > { %389 = vmatprep.subr.bf16.mxu0 %v921_v8  ;;  %v915_v14 = vld [vmem:[#allocation2 + $0x80] ss:$12 sps:$4 sm:$0xff]   ;;  %s1178_s23 = scalar_select %p217_p5, %s1107_s19, 1  ;;  %v929_v15 = vld [vmem:[#allocation2 + $0x48] ss:$12 sps:$4 sm:$0xff]   ;;  %v945_v30 = vld [vmem:[%s1283_s3 + $0x18] sm:$0xff]  }
  0x3a   : > { %v930_v16 = vld [vmem:[#allocation2 + $0x64] ss:$12 sps:$4 sm:$0xff]   ;;  %v932_v18 = vld [vmem:[#allocation2 + $0x60] ss:$12 sps:$4 sm:$0xff]   ;;  %v933_v19 = vld [vmem:[#allocation2 + $0x7c] ss:$12 sps:$4 sm:$0xff]  }
  0x3b   : > { %811 = vmatpush3.bf16.msra.mxu1 %v911_v3  ;;  %v916_v17 = vld [vmem:[#allocation2 + $0x98] ss:$12 sps:$4 sm:$0xff]   ;;  %s748_s27 = sshll.u32 %s1178_s23, 2  ;;  %v917_v20 = vld [vmem:[#allocation2 + $0xb0] ss:$12 sps:$4 sm:$0xff]   ;;  %v943_v28 = vld [vmem:[%s1283_s3 + $0x8] sm:$0xff]  }
  0x3c   : > { %812 = vmatprep.subr.bf16.mxu1 %v1057_v0  ;;  %390 = vmatpush1.bf16.msra.mxu0 %v923_v9  ;;  %s220_s30 = scalar_lea.vmem %s1280_s0, %s748_s27  ;;  %v935_v21 = vld [vmem:[#allocation2 + $0x78] ss:$12 sps:$4 sm:$0xff]   ;;  %v936_v22 = vld [vmem:[#allocation2 + $0x94] ss:$12 sps:$4 sm:$0xff]   ;;  %v938_v24 = vld [vmem:[#allocation2 + $0x90] ss:$12 sps:$4 sm:$0xff]   ;;  %s224_s8 = scalar_lea.vmem %s1281_s1, %s748_s27 }
  0x3d   : > { %391 = vmatprep.subr.bf16.mxu0 %v924_v10  ;;  %v226_v23 = vld [vmem:[%s220_s30] sm:$0xf]  ;;  %v939_v25 = vld [vmem:[#allocation2 + $0xac] ss:$12 sps:$4 sm:$0xff]   ;;  %v941_v26 = vld [vmem:[#allocation2 + $0xa8] ss:$12 sps:$4 sm:$0xff]  }
  0x3e   : > { %v942_v27 = vld [vmem:[%s1283_s3] sm:$0xff]   ;;  %v944_v29 = vld [vmem:[%s1283_s3 + $0x10] sm:$0xff]   ;;  %v947_v32 = vld [vmem:[%s1283_s3 + $0x28] sm:$0xff]   ;;  %vm589_vm1 = vcmask 64512   ;;  %vm599_vm2 = vcmask 1043456   ;;  %s214_s23 = sand.u32 1, %s1044_s16  }
  0x3f   : > { %813 = vmatpush3.bf16.msra.mxu1 %v912_v4  ;;  %v946_v31 = vld [vmem:[%s1283_s3 + $0x20] sm:$0xff]   ;;  %v948_v33 = vld [vmem:[%s1283_s3 + $0x30] sm:$0xff]   ;;  %v949_v47 = vld [vmem:[%s1283_s3 + $0x38] sm:$0xff]   ;;  %s747_s27 = sshll.u32 %s214_s23, 3  ;;  %s785_s9 = sshll.u32 %s1107_s19, 7 }
  0x40   : > { %814 = vmatprep.subr.bf16.mxu1 %v1057_v0  ;;  %392 = vmatpush1.bf16.msra.mxu0 %v926_v12  ;;  %v587_v48 = vld [vmem:[%s224_s8] sm:$0xf]  ;;  %s216_s10 = scalar_lea.vmem [#allocation5], %s747_s27  ;;  %s1238_s14 = scalar_lea.hbm %s1284_s4, %s785_s9 }
  0x41   : > { %393 = vmatprep.subr.bf16.mxu0 %v927_v13  ;;  %v588_v49 = vunpack.c.l.bf16 %v587_v48  ;;  %s658_s11 = sshll.u32 %s216_s10, 4  ;;  %s645_s20 = scalar_lea.sflag [#allocation4], %s214_s23  ;;  %s1240_s11 = int_to_ptr.vmem [resolvable:$true] %s658_s11 }
  0x42   : > { %s986_s19 = scalar_lea.vmem %s1240_s11, 128  ;;  %p1295_p9 = scmp.ne.s32.totalorder %s1288_s25, 0 }
  0x43   : > { %815 = vmatpush3.bf16.msra.mxu1 %v913_v7  ;;  %v590_v50 = vsel %vm589_vm1, %v588_v49, 0.0  ;;  %p987_p6 = scmp.ne.s32.totalorder %s1240_s11, %s986_s19  ;;  %s1060_s22 = smov [#allocation5]  }
  0x44   : > { %816 = vmatprep.subr.bf16.mxu1 %v1057_v0  ;;  %394 = vmatpush1.bf16.msra.mxu0 %v929_v15  ;;  %s990_s28 = sshll.u32 %s1060_s22, 4  ;;  %s991_s28 = int_to_ptr.vmem [resolvable:$false] %s990_s28 }
  0x45   : > { %395 = vmatprep.subr.bf16.mxu0 %v930_v16  ;;  %p988_p10 = pnand %p987_p6, %p1295_p9  ;;  %s992_s29 = scalar_lea.vmem %s991_s28, 256 }
  0x46   : > { %p993_p2 = scmp.lt.s32.totalorder %s1240_s11, %s991_s28  ;;  %p994_p3 = scmp.lt.s32.totalorder %s992_s29, %s986_s19 }
  0x47   : > { %817 = vmatpush3.bf16.msra.mxu1 %v914_v11  ;;  %p989_p12 = pneg %p988_p10 }
  0x48   : > { %818 = vmatprep.subr.bf16.mxu1 %v1057_v0  ;;  %396 = vmatpush1.bf16.msra.mxu0 %v932_v18  ;;  %p995_p4 = por %p994_p3, %p993_p2 }
  0x49   : > { %397 = vmatprep.subr.bf16.mxu0 %v933_v19 }
  0x4a   : > { %p996_p7 = pnand %p995_p4, %p989_p12 }
  0x4b   : > { %819 = vmatpush3.bf16.msra.mxu1 %v915_v14 }
  0x4c   : > { %820 = vmatprep.subr.bf16.mxu1 %v1057_v0  ;;  %398 = vmatpush1.bf16.msra.mxu0 %v935_v21 }
  0x4d   : > { %399 = vmatprep.subr.bf16.mxu0 %v936_v22 }
  0x4f   : > { %821 = vmatpush3.bf16.msra.mxu1 %v916_v17 }
  0x50   : > { %822 = vmatprep.subr.bf16.mxu1 %v1057_v0  ;;  %400 = vmatpush1.bf16.msra.mxu0 %v938_v24 }
  0x51   : > { %401 = vmatprep.subr.bf16.mxu0 %v939_v25 }
  0x53   : > { %823 = vmatpush3.bf16.msra.mxu1 %v917_v20 }
  0x54   : > { %848 = vmatprep.subr.bf16.mxu1 %v1057_v0  ;;  %402 = vmatpush1.bf16.msra.mxu0 %v941_v26 }
  0x55   : > { %828 = vmatprep.subr.bf16.mxu0 %v1057_v0 }
  0x56   : > { %825 = vmatmul.mubr.bf16.vlgmr.msra.gmra.mrb[0].mxu1 %v226_v23 }
  0x57   : > { %850 = vmatprep.mubr.msk.bf16.mxu1 %vm1058_vm0, %v1057_v0  ;;  %420 = vmatmul.mubr.bf16.vlgmr.msra.gmra.mrb[0].mxu0 %v226_v23 }
  0x58   : > { %844 = vmatprep.mubr.msk.bf16.mxu0 %vm1058_vm0, %v1057_v0  ;;  %829 = vmatpush3.bf16.msra.mxu0 %v942_v27 }
  0x59   : > { %830 = vmatprep.subr.bf16.mxu0 %v1057_v0 }
  0x5c   : > { %831 = vmatpush3.bf16.msra.mxu0 %v943_v28 }
  0x5d   : > { %832 = vmatprep.subr.bf16.mxu0 %v1057_v0 }
  0x60   : > { %833 = vmatpush3.bf16.msra.mxu0 %v944_v29 }
  0x61   : > { %834 = vmatprep.subr.bf16.mxu0 %v1057_v0 }
  0x64   : > { %835 = vmatpush3.bf16.msra.mxu0 %v945_v30 }
  0x65   : > { %836 = vmatprep.subr.bf16.mxu0 %v1057_v0 }
  0x68   : > { %837 = vmatpush3.bf16.msra.mxu0 %v946_v31 }
  0x69   : > { %838 = vmatprep.subr.bf16.mxu0 %v1057_v0 }
  0x6c   : > { %839 = vmatpush3.bf16.msra.mxu0 %v947_v32 }
  0x6d   : > { %840 = vmatprep.subr.bf16.mxu0 %v1057_v0 }
  0x70   : > { %841 = vmatpush3.bf16.msra.mxu0 %v948_v33 }
  0x71   : > { %842 = vmatprep.subr.bf16.mxu0 %v1057_v0 }
  0x74   : > { %843 = vmatpush3.bf16.msra.mxu0 %v949_v47 }
 0x129   : > { %v462_v34 = vpop.f32.mrb[0].mxu1 }
 0x12a   : > { %950 = vtanh.f32 %v462_v34  ;;  %v826_v35 = vpop.f32.mrb[1].mxu1  ;;  %v421_v38 = vpop.f32.mrb[0].mxu0 }
 0x12b   : > { %v465_v36 = vpop.f32.mrb[2].mxu1  ;;  %v423_v40 = vpop.f32.mrb[1].mxu0 }
 0x12c   : > { %v827_v37 = vpop.f32.mrb[3].mxu1  ;;  %v425_v42 = vpop.f32.mrb[2].mxu0 }
 0x12d   : > { %v426_v43 = vpop.f32.mrb[3].mxu0 }
 0x134   : > { %v951_v39 = vpop.eup %950 }
 0x135   : > { %v774_v41 = vmul.f32 -1.442695, %v951_v39 }
 0x137   : > { %952 = vpow2.f32 %v774_v41 }
 0x141   : > { %v953_v44 = vpop.eup %952 }
 0x142   : > { %v472_v45 = vadd.f32 1.0, %v953_v44 }
 0x144   : > { %954 = vrcp.f32 %v472_v45 }
 0x14e   : > { %v955_v46 = vpop.eup %954 }
 0x14f   : > { %477 = vperm.xlu0 %909, %v955_v46  }
 0x16e   : > { %591 = vadd.xlane.f32.xlu0 %v590_v50 }
 0x1ce   : > { %v478_v51 = vpop.permute.xlu0 %477 }
 0x1cf   : > { %v480_v52 = vmul.f32 %v478_v51, %v421_v38 }
 0x1d1   : > { %v481_v53 = vpack.c.bf16 %v480_v52, %v480_v52 }
 0x1d3   : > { %845 = vmatmul.mubr.bf16.vlgmr.msra.gmra.mrb[4].mxu0 %v481_v53 }
 0x1fb   : > { %v592_v54 = vpop.xlane.xlu0 %591 }
 0x1fc   : > { %956 = vrcp.f32 %v592_v54 }
 0x206   : > { %v957_v55 = vpop.eup %956 }
 0x207   : > { %v594_v56 = vmul.f32 %v957_v55, %v588_v49 }
 0x209   : > { %v595_v61 = vpack.c.bf16 %v594_v56, %v594_v56 }
 0x2a6   : > { %v580_v57 = vpop.f32.mrb[4].mxu0 }
 0x2a7   : > { %v586_v58 = vpack.c.bf16 %v580_v57, %v580_v57  ;;  %v846_v59 = vpop.f32.mrb[5].mxu0 }
 0x2a8   : > { %v583_v60 = vpop.f32.mrb[6].mxu0 }
 0x2a9   : > { %v601_v62 = vsel %vm599_vm2, %v586_v58, 0  ;;  %v847_v63 = vpop.f32.mrb[7].mxu0 }
 0x2aa   : > { %849 = vmatpush3.bf16.msra.mxu1 %v601_v62 }
 0x2ad   : > { %851 = vmatmul.mubr.msk.bf16.vlgmr.msra.gmra.mrb[4].mxu1 %vm589_vm1, %v595_v61 }
 0x380   : > { %v637_v0 = vpop.f32.mrb[4].mxu1 }
 0x381   : > { %v638_v1 = vadd.f32 %v637_v0, %v423_v40  ;;  %v852_v2 = vpop.f32.mrb[5].mxu1 }
 0x382   : > { %v640_v3 = vpop.f32.mrb[6].mxu1 }
 0x383   : > { %643 = vst [vmem:[%s216_s10] sm:$0xff] %v638_v1  ;;  %v853_v4 = vpop.f32.mrb[7].mxu1 }
 0x384   : > { %999 = shalt.err (!%p996_p7)
}
 0x385   : > { %s1000_s30 = scalar_lea.hbm %s1238_s14, 128  ;;  %s1004_s7 = scalar_lea.hbm %s1284_s4, 256 }
 0x386   : > { %p1001_p8 = scmp.ne.s32.totalorder %s1238_s14, %s1000_s30  ;;  %p1005_p1 = scmp.lt.u32.totalorder %s1238_s14, %s1284_s4 }
 0x387   : > { %p1006_p0 = scmp.lt.u32.totalorder %s1004_s7, %s1000_s30  ;;  %p1008_p6 = scmp.lt.u32.totalorder %s1000_s30, %s1238_s14 }
 0x388   : > { %p1002_p11 = pnand %p1001_p8, %p1295_p9 }
 0x389   : > { %p1007_p5 = por %p1006_p0, %p1005_p1 }
 0x38a   : > { %p1003_p13 = pneg %p1002_p11 }
 0x38b   : > { %p1009_p10 = por %p1008_p6, %p1007_p5 }
 0x38d   : > { %p1010_p12 = pnand %p1009_p10, %p1003_p13 }
 0x38f   : > { %1013 = shalt.err (!%p1010_p12)
}
 0x390   : > { %858 = dma.vmem_to_hbm [thread:$0]  (%p1295_p9), %s1240_s11, 128, %s1238_s14, %s645_s20  }
 0x391 PF: > { %p870_p2 = scmp.ge.s32.totalorder %s1052_s18, 2  ;;  %s670_s27 = sand.u32 1, %s1040_s15  }
 0x392   : > { %p1296_p3 = scmp.ne.s32.totalorder %s1289_s26, 0  ;;  %s671_s9 = scalar_lea.sflag [#allocation4], %s670_s27 }
 0x394   : > { %p865_p4 = pnand %p870_p2, %p1296_p3 }
 0x396   : > { %1035 = dma.done.wait (!%p865_p4), %s671_s9, 128  }
 0x397   : > { %1037 = vsyncadd (!%p865_p4), %s671_s9, 4294967168  ;;  %p15_p7 = scmp.ge.s32.totalorder %s1111_s21, 4   ;;  %s1297_s15 = smov %s1044_s16 }
 0x398   : > { %s1298_s16 = smov %s1048_s17  ;;  %s1299_s17 = smov %s1122_s24 }
 0x399   : > { %s1300_s18 = smov %s1111_s21  ;;  %17 = sbr.rel (!%p15_p7) target bundleno = 4 (0x4), region = 79 }
 0x3a0   :  { %676 = vsyncpa [#allocation3], 1 }
 0x3a1   :  { %678 = vsyncpa [#allocation3 + $0x1], 1 }
 0x3a2   :  { %679 = vsyncpa [#allocation4], 1 }
 0x3a3   :  { %681 = vsyncpa [#allocation4 + $0x1], 1 }

</bundles_post_ra>
